<compile_context>
chip_gen: v5e
topology: v5e:2x2
jax: 0.10.0
libtpu: 0.0.40
codegen_flags: <defaults>
</compile_context>

<pallas_src>
import jax
import jax.numpy as jnp
from jax.experimental import pallas as pl
from jax.experimental.pallas import tpu as pltpu


# ------------------------------ Pallas kernels ------------------------------ #

def _basic_block_kernel(x_ref, adj_ref, w_ref, o_ref):
    """One batch element, fully fused: masked-ReLU(adj @ (x @ W))."""
    xw = jnp.dot(x_ref[...], w_ref[...], preferred_element_type=jnp.float32)   # (N, Dout)
    h = jnp.dot(adj_ref[...], xw, preferred_element_type=jnp.float32)          # (N, Dout)
    row_sum = jnp.sum(h, axis=-1, keepdims=True)                               # (N, 1)
    # ReLU only where the row sum is non-zero, exactly like the PyTorch indexing trick.
    o_ref[...] = jnp.where(row_sum != 0.0, jnp.maximum(h, 0.0), h).astype(o_ref.dtype)


def _basic_block_kernel_with_d(x_ref, adj_ref, w_ref, d_ref, o_ref):
    """Same as above plus the optional `output * 1.0 / D` normalization."""
    xw = jnp.dot(x_ref[...], w_ref[...], preferred_element_type=jnp.float32)
    h = jnp.dot(adj_ref[...], xw, preferred_element_type=jnp.float32)
    h = h * pl.reciprocal(d_ref[...], approx=True)          # divide on the (idle) EUP slot
    row_sum = jnp.sum(h, axis=-1, keepdims=True)
    o_ref[...] = jnp.where(row_sum != 0.0, jnp.maximum(h, 0.0), h).astype(o_ref.dtype)


# ------------------------------ host wrapper -------------------------------- #

def basic_block_forward(x, adj, w, d=None):
    """x: (B,N,Din), adj: (B,N,N), w: (Din,Dout), d: None | (B,N) | (B,N,1)."""
    B, N, Din = x.shape
    Dout = w.shape[1]

    in_specs = [
        pl.BlockSpec((pl.Squeezed(), N, Din), lambda b: (b, 0, 0)),   # per-batch features
        pl.BlockSpec((pl.Squeezed(), N, N), lambda b: (b, 0, 0)),     # per-batch adjacency
        pl.BlockSpec((Din, Dout), lambda b: (0, 0)),                  # grid-invariant weight
    ]
    args = [x, adj, w]
    kernel = _basic_block_kernel
    if d is not None:
        d = d.reshape(B, N, 1).astype(jnp.float32)
        in_specs.append(pl.BlockSpec((pl.Squeezed(), N, 1), lambda b: (b, 0, 0)))
        args.append(d)
        kernel = _basic_block_kernel_with_d

    return pl.pallas_call(
        kernel,
        out_shape=jax.ShapeDtypeStruct((B, N, Dout), jnp.float32),
        grid_spec=pltpu.PrefetchScalarGridSpec(
            num_scalar_prefetch=0,
            grid=(B,),
            in_specs=in_specs,
            out_specs=pl.BlockSpec((pl.Squeezed(), N, Dout), lambda b: (b, 0, 0)),
        ),
        compiler_params=pltpu.CompilerParams(dimension_semantics=("parallel",)),
    )(*args)


# ------------------------------ module wrapper ------------------------------ #

class BasicBlockPallas:
    """Mirrors dsgcn BasicBlock(inplanes, planes, freeze_bn, dropout)."""

    def __init__(self, inplanes, planes, freeze_bn, dropout=0.0, key=None):
        self.inplanes = inplanes
        self.planes = planes
        self.freeze_bn = freeze_bn          # no numerical effect in the reference forward
        self.dropout = dropout
        # TODO(synk): nn.BatchNorm1d(planes) and nn.Dropout are constructed by the reference
        #             module but never applied inside forward() (only bn.eval() is toggled),
        #             so no BN/dropout math is lowered here.
        if key is None:
            key = jax.random.PRNGKey(42)
        stdv = 1.0 / (planes ** 0.5)        # GraphConv.reset_parameters: 1/sqrt(out_features)
        self.weight = jax.random.uniform(key, (inplanes, planes), jnp.float32, -stdv, stdv)

    def forward(self, x, adj, index=None, D=None):
        del index                            # unused in the reference forward
        return basic_block_forward(x, adj, self.weight, d=D)


# ---------------------------------- main ------------------------------------ #

if __name__ == "__main__":
    B, N = 2, 16
    INPLANES, PLANES = 32, 32

    key = jax.random.PRNGKey(0)
    kx, ka = jax.random.split(key, 2)
    x = jax.random.normal(kx, (B, N, INPLANES), jnp.float32)
    adj = jax.random.uniform(ka, (B, N, N), jnp.float32)
    adj = adj / jnp.sum(adj, axis=-1, keepdims=True)     # row-normalized adjacency

    block = BasicBlockPallas(INPLANES, PLANES, freeze_bn=True, dropout=0.0,
                             key=jax.random.PRNGKey(123))

    y = block.forward(x, adj, index=None, D=None)        # D defaults to None, as in the module
    y = jax.block_until_ready(y)
    assert y.shape == (B, N, PLANES)

    # Pure-JAX reference for a sanity check.
    xw_ref = jnp.einsum("bnk,kd->bnd", x, block.weight,
                        precision=jax.lax.Precision.HIGHEST)
    h_ref = jnp.einsum("bij,bjd->bid", adj, xw_ref,
                       precision=jax.lax.Precision.HIGHEST)
    mask = jnp.sum(h_ref, axis=-1, keepdims=True) != 0.0
    ref = jnp.where(mask, jnp.maximum(h_ref, 0.0), h_ref)
    assert jnp.allclose(y, ref, rtol=1e-2, atol=1e-2)

    print("KERNEL_OK")
</pallas_src>

<mosaic_0001>
module attributes {stable_mosaic.version = 11 : i64} {
  func.func @_basic_block_kernel(%arg0: i32, %arg1: memref<1x16x32xf32, #tpu.memory_space<vmem>>, %arg2: memref<1x16x16xf32, #tpu.memory_space<vmem>>, %arg3: memref<32x32xf32, #tpu.memory_space<vmem>>, %arg4: memref<1x16x32xf32, #tpu.memory_space<vmem>>) attributes {dimension_semantics = [#tpu.dimension_semantics<parallel>], iteration_bounds = array<i64: 2>, scalar_prefetch = 0 : i64, scratch_operands = 0 : i64, tpu.core_type = #tpu.core_type<tc>, window_params = [{transform_indices = @transform_0, window_bounds = array<i64: 1, 16, 32>}, {transform_indices = @transform_1, window_bounds = array<i64: 1, 16, 16>}, {pipeline_mode = #tpu.pipeline_mode<synchronous>, transform_indices = @transform_2, window_bounds = array<i64: 32, 32>}, {transform_indices = @transform_3, window_bounds = array<i64: 1, 16, 32>}]} {
    %c0 = arith.constant 0 : index
    %c0_0 = arith.constant 0 : index
    %c0_1 = arith.constant 0 : index
    %0 = vector.load %arg1[%c0, %c0_0, %c0_1] : memref<1x16x32xf32, #tpu.memory_space<vmem>>, vector<1x16x32xf32>
    %1 = vector.shape_cast %0 : vector<1x16x32xf32> to vector<16x32xf32>
    %c0_2 = arith.constant 0 : index
    %c0_3 = arith.constant 0 : index
    %2 = vector.load %arg3[%c0_2, %c0_3] : memref<32x32xf32, #tpu.memory_space<vmem>>, vector<32x32xf32>
    %cst = arith.constant dense<0.000000e+00> : vector<16x32xf32>
    %3 = tpu.matmul %1, %2, %cst {dimension_numbers = #tpu.dot_dimension_numbers<[1], [0], [0], [1], [0, 0, 1, 1], [], []>} : vector<16x32xf32>, vector<32x32xf32>, vector<16x32xf32> -> vector<16x32xf32>
    %c0_4 = arith.constant 0 : index
    %c0_5 = arith.constant 0 : index
    %c0_6 = arith.constant 0 : index
    %4 = vector.load %arg2[%c0_4, %c0_5, %c0_6] : memref<1x16x16xf32, #tpu.memory_space<vmem>>, vector<1x16x16xf32>
    %5 = vector.shape_cast %4 : vector<1x16x16xf32> to vector<16x16xf32>
    %cst_7 = arith.constant dense<0.000000e+00> : vector<16x32xf32>
    %6 = tpu.matmul %5, %3, %cst_7 {dimension_numbers = #tpu.dot_dimension_numbers<[1], [0], [0], [1], [0, 0, 1, 1], [], []>} : vector<16x16xf32>, vector<16x32xf32>, vector<16x32xf32> -> vector<16x32xf32>
    %cst_8 = arith.constant dense<0.000000e+00> : vector<16xf32>
    %7 = vector.multi_reduction <add>, %6, %cst_8 [1] : vector<16x32xf32> to vector<16xf32>
    %8 = vector.shape_cast %7 : vector<16xf32> to vector<16x1xf32>
    %cst_9 = arith.constant 0.000000e+00 : f32
    %9 = vector.broadcast %cst_9 : f32 to vector<16x1xf32>
    %10 = arith.cmpf one, %8, %9 : vector<16x1xf32>
    %cst_10 = arith.constant 0.000000e+00 : f32
    %11 = vector.broadcast %cst_10 : f32 to vector<16x32xf32>
    %12 = arith.maximumf %6, %11 : vector<16x32xf32>
    %13 = vector.shape_cast %10 : vector<16x1xi1> to vector<16x1xi1>
    %14 = vector.broadcast %13 : vector<16x1xi1> to vector<16x32xi1>
    %15 = arith.select %14, %12, %6 : vector<16x32xi1>, vector<16x32xf32>
    %c0_11 = arith.constant 0 : index
    %c0_12 = arith.constant 0 : index
    %c0_13 = arith.constant 0 : index
    %16 = vector.load %arg4[%c0_11, %c0_12, %c0_13] : memref<1x16x32xf32, #tpu.memory_space<vmem>>, vector<1x16x32xf32>
    %17 = vector.shape_cast %16 : vector<1x16x32xf32> to vector<16x32xf32>
    %18 = vector.shape_cast %15 : vector<16x32xf32> to vector<1x16x32xf32>
    tpu.vector_store %arg4[%c0_11, %c0_12, %c0_13], %18 {strides = array<i32>} : memref<1x16x32xf32, #tpu.memory_space<vmem>>, vector<1x16x32xf32>,
    return
  }
  func.func @transform_0(%arg0: i32) -> (i32, i32, i32) {
    %c0_i32 = arith.constant 0 : i32
    %c0_i32_0 = arith.constant 0 : i32
    %c0_i32_1 = arith.constant 0 : i32
    return %arg0, %c0_i32, %c0_i32_0 : i32, i32, i32
  }
  func.func @transform_1(%arg0: i32) -> (i32, i32, i32) {
    %c0_i32 = arith.constant 0 : i32
    %c0_i32_0 = arith.constant 0 : i32
    %c0_i32_1 = arith.constant 0 : i32
    return %arg0, %c0_i32, %c0_i32_0 : i32, i32, i32
  }
  func.func @transform_2(%arg0: i32) -> (i32, i32) {
    %c0_i32 = arith.constant 0 : i32
    %c0_i32_0 = arith.constant 0 : i32
    %c0_i32_1 = arith.constant 0 : i32
    return %c0_i32, %c0_i32_0 : i32, i32
  }
  func.func @transform_3(%arg0: i32) -> (i32, i32, i32) {
    %c0_i32 = arith.constant 0 : i32
    %c0_i32_0 = arith.constant 0 : i32
    %c0_i32_1 = arith.constant 0 : i32
    return %arg0, %c0_i32, %c0_i32_0 : i32, i32, i32
  }
}

</mosaic_0001>

<bundles_post_ra>
// kernel: tpu_custom_call.1
= control target key start
LH: loop header
LB: loop body
LE: loop exit
PB: predicated region body
PF: predicated region fallthrough
CT: control target
= control target key end

     0   :  { %s932_s0 = inlined_call_operand.hbm [shape: f32[2,16,32], index: 0, kind: input, shape index: {}]   ;;  %s933_s1 = inlined_call_operand.hbm [shape: f32[2,16,16], index: 1, kind: input, shape index: {}]   ;;  %s934_s2 = inlined_call_operand.hbm [shape: f32[32,32], index: 2, kind: input, shape index: {}]   ;;  %s935_s3 = inlined_call_operand.hbm [shape: f32[2,16,32], index: 3, kind: output, shape index: {}]  }
   0x1   :  { %940 = sst [smem:[#allocation13_spill]] %s932_s0 }
   0x2   :  { %8 = vsyncpa [#allocation3], 0 }
   0x3   :  { %10 = vsyncpa [#allocation3 + $0x1], 0 }
   0x4   :  { %11 = vsyncpa [#allocation6], 0 }
   0x5   :  { %13 = vsyncpa [#allocation6 + $0x1], 0 }
   0x6   :  { %14 = vsyncpa [#allocation4], 0 }
   0x7   :  { %16 = vsyncpa [#allocation4 + $0x1], 0  ;;  %s746_s12 = smov 0   ;;  %s748_s13 = smov 0  }
   0x8   :  { %s750_s14 = smov 0   ;;  %s752_s15 = smov 0  }
   0x9 LB: > { %s767_s16 = sadd.s32 4294967295, %s719_s15   ;;  %s456_s17 = sadd.s32 4294967294, %s719_s15   ;;  %s719_s15 = sphi %s752_s15, %s953_s15   ;;  %s715_s14 = sphi %s750_s14, %s952_s14   ;;  %s711_s13 = sphi %s748_s13, %s951_s13   ;;  %s707_s12 = sphi %s746_s12, %s950_s12  }
   0xa   : > { %p42_p0 = scmp.ne.s32.totalorder %s711_s13, %s707_s12  ;;  %p43_p1 = scmp.eq.s32.totalorder %s767_s16, 0 }
   0xb   : > { %p113_p2 = scmp.eq.s32.totalorder %s767_s16, 1  ;;  %p119_p3 = scmp.eq.s32.totalorder %s456_s17, 1 }
   0xc   : > { %p776_p4 = por %p43_p1, %p42_p0  ;;  %p457_p5 = scmp.ge.s32.totalorder %s719_s15, 1 }
   0xd   : > { %p781_p6 = por %p119_p3, %p42_p0  ;;  %p126_p7 = scmp.lt.s32.totalorder %s719_s15, 3 }
   0xe   : > { %s137_s22 = sshll.u32 %s934_s2, 4  ;;  %s721_s24 = smov [#allocation7]   ;;  %s138_s22 = int_to_ptr.hbm [resolvable:$true] %s137_s22 }
   0xf   : > { %p789_p8 = pnand %p457_p5, %p126_p7  ;;  %s139_s25 = sshll.u32 %s721_s24, 4  ;;  %s140_s25 = int_to_ptr.vmem [resolvable:$true] %s139_s25 }
  0x10   : > { %s799_s26 = sadd.s32 1, %s719_s15   ;;  %s936_s27 = smov 128  }
  0x11   : > { %p499_p9 = pneg %p789_p8  ;;  %s938_s28 = smov 8  }
  0x12   : > { %s26_s29 = ssub.s32 %s719_s15, %s799_s26  ;;  %s29_s30 = sadd.s32 1, %s715_s14 }
  0x13   : > { %p500_p10 = pnand %p499_p9, %p43_p1  ;;  %p27_p12 = scmp.eq.s32.totalorder %s26_s29, 0 }
  0x14   : > { %p36_p13 = scmp.ne.s32.totalorder %s715_s14, %s711_s13  ;;  %p37_p0 = scmp.eq.s32.totalorder %s719_s15, 0 }
  0x15   : > { %502 = dma.hbm_to_vmem [thread:$0]  (!%p500_p10), %s138_s22, 512, %s140_s25, [#allocation6], %s936_s27, %s936_s27, %s938_s28  }
  0x16   : > { %p515_p3 = scmp.lt.s32.totalorder %s719_s15, 2  ;;  %p38_p5 = por %p37_p0, %p36_p13 }
  0x17   : > { %s812_s4 = scalar_select %p27_p12, %s715_s14, %s29_s30  }
  0x18   : > { %p816_p7 = por %p113_p2, %p36_p13  ;;  %s153_s6 = sand.u32 1, %s715_s14  }
  0x19   : > { %s480_s7 = sshll.u32 %s719_s15, 4  ;;  %s460_s8 = sshll.u32 %s153_s6, 4 }
  0x1a   : > { %s945_s0 = sld [smem:[#allocation13_spill]]  ;;  %s157_s20 = scalar_lea.vmem [#allocation2], %s460_s8 }
  0x1b   : > { %s165_s21 = sshll.u32 %s157_s20, 4  ;;  %p827_p9 = pnand %p515_p3, %p38_p5  ;;  %s166_s21 = int_to_ptr.vmem [resolvable:$true] %s165_s21 }
  0x1c   : > { %s184_s29 = scalar_lea.hbm %s933_s1, %s480_s7  ;;  %s179_s30 = scalar_lea.vmem [#allocation5], %s460_s8 }
  0x1d   : > { %s834_s27 = sshll.u32 %s179_s30, 4  ;;  %s185_s9 = sshll.u32 %s184_s29, 4  ;;  %s186_s9 = int_to_ptr.hbm [resolvable:$true] %s185_s9  ;;  %s188_s27 = int_to_ptr.vmem [resolvable:$true] %s834_s27 }
  0x1e   : > { %s154_s10 = scalar_lea.sflag [#allocation3], %s153_s6  ;;  %p589_p10 = pneg %p827_p9 }
  0x20   : > { %s162_s11 = scalar_lea.hbm %s945_s0, %s480_s7  ;;  %s592_s25 = scalar_lea.hbm %s945_s0, 32 }
  0x21   : > { %s163_s17 = sshll.u32 %s162_s11, 4  ;;  %s164_s17 = int_to_ptr.hbm [resolvable:$true] %s163_s17 }
  0x22   : > { %s585_s11 = sshra.s32 %s164_s17, 4  ;;  %s586_s11 = int_to_ptr.hbm [resolvable:$true] %s585_s11 }
  0x23   : > { %s587_s20 = scalar_lea.hbm %s586_s11, 16  ;;  %p593_p0 = scmp.lt.s32.totalorder %s586_s11, %s945_s0 }
  0x24   : > { %p588_p2 = scmp.ne.s32.totalorder %s586_s11, %s587_s20  ;;  %p594_p3 = scmp.lt.s32.totalorder %s592_s25, %s587_s20 }
  0x26   : > { %p590_p12 = pnand %p589_p10, %p588_p2  ;;  %p595_p5 = por %p594_p3, %p593_p0 }
  0x28   : > { %p591_p13 = pneg %p590_p12 }
  0x2a   : > { %p596_p11 = pnand %p595_p5, %p591_p13 }
  0x2c   : > { %599 = shalt.err (!%p596_p11)
}
  0x2d   : > { %s947_s6 = smov 8   ;;  %s948_s29 = smov 128  }
  0x2e   : > { %506 = dma.hbm_to_vmem [thread:$0]  (!%p827_p9), %s164_s17, 256, %s166_s21, %s154_s10, %s948_s29, %s948_s29, %s947_s6  }
  0x2f   : > { %s175_s28 = sand.u32 1, %s719_s15   ;;  %s615_s24 = sshra.s32 %s186_s9, 4  ;;  %s616_s24 = int_to_ptr.hbm [resolvable:$true] %s615_s24 }
  0x30   : > { %s176_s30 = scalar_lea.sflag [#allocation6], %s175_s28  ;;  %s617_s11 = scalar_lea.hbm %s616_s24, 16 }
  0x31   : > { %p618_p2 = scmp.ne.s32.totalorder %s616_s24, %s617_s11  ;;  %s622_s7 = scalar_lea.hbm %s933_s1, 32 }
  0x32   : > { %p623_p13 = scmp.lt.s32.totalorder %s616_s24, %s933_s1  ;;  %p624_p0 = scmp.lt.s32.totalorder %s622_s7, %s617_s11 }
  0x33   : > { %p620_p11 = pnand %p618_p2, %p589_p10 }
  0x34   : > { %p625_p3 = por %p624_p0, %p623_p13 }
  0x35   : > { %p621_p12 = pneg %p620_p11 }
  0x37   : > { %p626_p5 = pnand %p625_p3, %p621_p12 }
  0x39   : > { %629 = shalt.err (!%p626_p5)
}
  0x3a   : > { %509 = dma.hbm_to_vmem [thread:$0]  (!%p827_p9), %s186_s9, 256, %s188_s27, %s176_s30, %s948_s29, %s948_s29, %s947_s6  }
  0x3b   : > { %199 = sbr.rel (%p789_p8) target bundleno = 470 (0x1d6), region = 32  ;;  %s871_s17 = sand.u32 (!%p789_p8), 1, %s711_s13  }
  0x3c   : > { %s874_s0 = sshll.u32 (!%p789_p8), %s871_s17, 4  ;;  %s202_s21 = scalar_lea.sflag (!%p789_p8), [#allocation3], %s871_s17 }
  0x3d   : > { %s205_s10 = scalar_lea.vmem (!%p789_p8), [#allocation2], %s874_s0 }
  0x40   : > { %690 = dma.done.wait (%p776_p4), %s202_s21, 256  }
  0x41   : > { %692 = vsyncadd (%p776_p4), %s202_s21, 4294967040  ;;  %s211_s23 = sand.u32 1, %s767_s16   ;;  %s215_s22 = scalar_lea.vmem [#allocation5], %s874_s0 }
  0x42   : > { %s212_s27 = scalar_lea.sflag [#allocation6], %s211_s23 }
  0x43   : > { %694 = dma.done.wait (%p776_p4), %s212_s27, 256  }
  0x44   : > { %696 = vsyncadd (%p776_p4), %s212_s27, 4294967040 }
  0x45   : > { %698 = dma.done.wait (%p43_p1), [#allocation6], 512  }
  0x46   : > { %700 = vsyncadd (%p43_p1), [#allocation6], 4294966784  ;;  %v254_v0 = vld [vmem:[#allocation7 + $0x18] sm:$0xff]  ;;  %v253_v1 = vld [vmem:[#allocation7 + $0x10] sm:$0xff]  ;;  %vm255_vm0 = vcmask 261120   ;;  %vm287_vm1 = vcmask 130048  }
  0x47   : > { %483 = vmatpush.msra.mxu2 %v254_v0  ;;  %274 = vmatpush.msra.mxu0 %v254_v0  ;;  %v252_v2 = vld [vmem:[#allocation7 + $0x8] sm:$0xff]  ;;  %v251_v3 = vld [vmem:[#allocation7] sm:$0xff]  ;;  %s482_s18 = sshll.u32 %s767_s16, 4  ;;  %s248_s28 = scalar_lea.vmem [#allocation8], %s874_s0 }
  0x48   : > { %v250_v4 = vld [vmem:[%s205_s10 + $0x8] sm:$0xff]  ;;  %v249_v5 = vld [vmem:[%s205_s10] sm:$0xff]  ;;  %s347_s29 = scalar_lea.hbm %s935_s3, %s482_s18  ;;  %s348_s30 = sshll.u32 %s248_s28, 4  ;;  %s349_s30 = int_to_ptr.vmem [resolvable:$true] %s348_s30 }
  0x49   : > { %484 = vmatpush.msra.mxu2 %v253_v1  ;;  %275 = vmatpush.msra.mxu0 %v253_v1  ;;  %v285_v8 = vld [vmem:[%s215_s22] sm:$0xff]  ;;  %v286_v9 = vld [vmem:[%s215_s22 + $0x8] sm:$0xff]  ;;  %s350_s24 = sshll.u32 %s347_s29, 4  ;;  %s336_s16 = scalar_lea.sflag [#allocation4], %s871_s17  ;;  %s351_s24 = int_to_ptr.hbm [resolvable:$true] %s350_s24 }
  0x4a   : > { %s659_s11 = sshra.s32 %s351_s24, 4  ;;  %s665_s8 = scalar_lea.hbm %s935_s3, 32  ;;  %s660_s11 = int_to_ptr.hbm [resolvable:$true] %s659_s11 }
  0x4b   : > { %485 = vmatpush.msra.mxu2 %v252_v2  ;;  %276 = vmatpush.msra.mxu0 %v252_v2  ;;  %s661_s20 = scalar_lea.hbm %s660_s11, 16  ;;  %p666_p9 = scmp.lt.s32.totalorder %s660_s11, %s935_s3 }
  0x4c   : > { %p662_p1 = scmp.ne.s32.totalorder %s660_s11, %s661_s20  ;;  %p667_p10 = scmp.lt.s32.totalorder %s665_s8, %s661_s20 }
  0x4d   : > { %486 = vmatpush.msra.mxu2 %v251_v3  ;;  %277 = vmatpush.msra.mxu0 %v251_v3 }
  0x4e   : > { %472 = vmatmul.msk.f32.vlgmr.msra.gmra.mxu2 %vm255_vm0, %v250_v4  ;;  %471 = vmatmul.msk.f32.vlgmr.msra.gmra.mxu0 %vm255_vm0, %v249_v5  ;;  %p663_p4 = pnand %p662_p1, %p816_p7  ;;  %p668_p2 = por %p667_p10, %p666_p9 }
  0x50   : > { %p664_p8 = pneg %p663_p4 }
  0x52   : > { %p669_p11 = pnand %p668_p2, %p664_p8 }
  0xcb   : > { %v279_v7 = vpop.f32.mrf.mxu0 }
  0xd1   : > { %v282_v6 = vpop.f32.mrf.mxu2 }
  0xd2   : > { %308 = vmatpush.msra.mxu1 %v282_v6  ;;  %487 = vmatpush.msra.mxu3 %v282_v6 }
  0xd4   : > { %309 = vmatpush.msra.mxu1 %v279_v7  ;;  %488 = vmatpush.msra.mxu3 %v279_v7 }
  0xd5   : > { %473 = vmatmul.msk.f32.vlgmr.msra.gmra.mxu1 %vm287_vm1, %v285_v8  ;;  %474 = vmatmul.msk.f32.vlgmr.msra.gmra.mxu3 %vm287_vm1, %v286_v9 }
 0x152   : > { %v311_v10 = vpop.f32.mrf.mxu1 }
 0x153   : > { %v317_v11 = vsel %vm255_vm0, %v311_v10, 0.0  ;;  %v325_v14 = vmax.f32 %v311_v10, 0.0 }
 0x154   : > { %318 = vadd.xlane.f32.xlu0 %v317_v11 }
 0x158   : > { %v314_v12 = vpop.f32.mrf.mxu3 }
 0x159   : > { %v320_v13 = vsel %vm255_vm0, %v314_v12, 0.0  ;;  %v326_v17 = vmax.f32 %v314_v12, 0.0 }
 0x15c   : > { %321 = vadd.xlane.f32.xlu0 %v320_v13 }
 0x1c7   : > { %v319_v15 = vpop.xlane.xlu0 %318 }
 0x1c8   : > { %vm323_vm2 = vcmp.ne.f32.partialorder %v319_v15, 0.0 }
 0x1c9   : > { %v331_v16 = vsel %vm323_vm2, %v325_v14, %v311_v10 }
 0x1ca   : > { %333 = vst.msk [vmem:[%s248_s28] sm:$0xff] %vm255_vm0, %v331_v16 }
 0x1cf   : > { %v322_v18 = vpop.xlane.xlu0 %321 }
 0x1d0   : > { %vm324_vm3 = vcmp.ne.f32.partialorder %v322_v18, 0.0 }
 0x1d1   : > { %v332_v19 = vsel %vm324_vm3, %v326_v17, %v314_v12 }
 0x1d2   : > { %334 = vst.msk [vmem:[%s248_s28 + $0x8] sm:$0xff] %vm255_vm0, %v332_v19 }
 0x1d3   : > { %672 = shalt.err (!%p669_p11)
}
 0x1d4   : > { %s724_s17 = smov 128   ;;  %s725_s10 = smov 8  }
 0x1d5   : > { %497 = dma.vmem_to_hbm [thread:$0]  (%p816_p7), %s349_s30, 256, %s351_s24, %s336_s16, %s724_s17, %s724_s17, %s725_s10  }
 0x1d6 PF: > { %s365_s23 = sand.u32 1, %s707_s12   ;;  %p949_p12 = scmp.ge.s32.totalorder %s719_s15, 2 }
 0x1d7   : > { %s366_s27 = scalar_lea.sflag [#allocation4], %s365_s23 }
 0x1d8   : > { %p511_p13 = pnand %p949_p12, %p781_p6 }
 0x1da   : > { %p512_p0 = pneg %p511_p13 }
 0x1dc   : > { %702 = dma.done.wait (%p512_p0), %s366_s27, 256  }
 0x1dd   : > { %704 = vsyncadd (%p512_p0), %s366_s27, 4294967040  ;;  %p19_p3 = scmp.ge.s32.totalorder %s799_s26, 4   ;;  %s950_s12 = smov %s711_s13 }
 0x1de   : > { %s951_s13 = smov %s715_s14  ;;  %s952_s14 = smov %s812_s4 }
 0x1df   : > { %s953_s15 = smov %s799_s26  ;;  %21 = sbr.rel (!%p19_p3) target bundleno = 9 (0x9), region = 94 }
 0x1e4   :  { %372 = vsyncpa [#allocation3], 1 }
 0x1e5   :  { %374 = vsyncpa [#allocation3 + $0x1], 1 }
 0x1e6   :  { %375 = vsyncpa [#allocation6], 1 }
 0x1e7   :  { %377 = vsyncpa [#allocation6 + $0x1], 1 }
 0x1e8   :  { %378 = vsyncpa [#allocation4], 1 }
 0x1e9   :  { %380 = vsyncpa [#allocation4 + $0x1], 1 }

</bundles_post_ra>
